<compile_context>
chip_gen: v7x
topology: tpu7x:2x2x1
jax: 0.10.0
libtpu: 0.0.40
codegen_flags: <defaults>
</compile_context>

<pallas_src>
import functools

import jax
import jax.numpy as jnp
from jax.experimental import pallas as pl
from jax.experimental.pallas import tpu as pltpu


def _round_down(x, n):
    return (x // n) * n


def _curvature_kernel(x_ref, out_ref, *, k, block_r, lane_c, grid_r,
                      steps_per_part, rem_rows):
    """Accumulate per-(sublane, lane) partial sums of |group-of-k sums|.

    x_ref  : (BLOCK_R, 128*K) VMEM tile of the flat, contiguous hessians.
    out_ref: (1, 8, 128*K)    per-part output block, used as the accumulator.
    """
    part = pl.program_id(0)
    i = pl.program_id(1)
    gstep = part * steps_per_part + i

    @pl.when(i == 0)
    def _init():
        out_ref[...] = jnp.zeros_like(out_ref)

    def _accumulate(mask_rows):
        x = x_ref[...].astype(jnp.float32)                 # (BLOCK_R, 128*K)
        # Symmetric group-of-k sum: s[l] = sum_{d=-c..k-1-c} x[l + d] with
        # c = (k-1)//2 (k odd), so the true group sums sit at lane % k == c.
        # Symmetric offsets make the result independent of the roll-direction
        # convention; row-wrap artefacts only touch lanes that are masked out
        # in the wrapper epilogue.
        c = (k - 1) // 2
        s = x
        for d in range(-c, k - c):
            if d == 0:
                continue
            s = s + pltpu.roll(x, (-d) % lane_c, 1)        # XLU lane rotation
        vals = jnp.abs(s)                                  # garbage at lane%k != c
        if mask_rows:
            # Only ever emitted for the (single) ragged last block.
            row = jax.lax.broadcasted_iota(jnp.int32, vals.shape, 0)
            vals = jnp.where(row < rem_rows, vals, 0.0)
        # Reduce sublane groups of 8 -> (8, 128*K): ~1 VPU add per input vreg,
        # followed by a tiny RMW of the resident accumulator block.
        partial = jnp.sum(vals.reshape(block_r // 8, 8, lane_c), axis=0)
        out_ref[0] += partial

    if rem_rows == block_r:
        @pl.when(gstep < grid_r)           # phantom steps of the last part skip
        def _main():
            _accumulate(False)
    else:
        @pl.when(jnp.logical_and(gstep < grid_r, gstep != grid_r - 1))
        def _main():
            _accumulate(False)

        @pl.when(gstep == grid_r - 1)      # ragged last block: mask its rows
        def _tail():
            _accumulate(True)


def curvature_loss(hessians, step=0, *, weight=0.0005, block_rows=2048,
                   num_parts=2, min_pallas_bytes=256 * 1024):
    """Pallas implementation of CurvatureLoss.forward -> (loss, weight)."""
    del step  # No scheduler configured in CurvatureLossConfig -> constant weight.

    k = hessians.shape[-1]
    m = 1
    for s in hessians.shape[:-1]:
        m *= s
    total_bytes = m * k * hessians.dtype.itemsize

    # Fast path: tiny inputs (pallas_call fixed cost dominates) or shapes the
    # dense layout cannot express (even K, or M not a multiple of 128).
    use_pallas = (
        k >= 1 and k % 2 == 1 and m % 128 == 0 and m >= 1024
        and total_bytes >= min_pallas_bytes
    )
    if not use_pallas:
        lap = jnp.sum(hessians.astype(jnp.float32), axis=-1)
        return jnp.mean(jnp.abs(lap)), float(weight)

    lane_c = 128 * k                      # 384 for K=3: lane- and group-aligned
    r = m // 128                          # rows; each row holds 128 Laplacians
    x2d = hessians.reshape(r, lane_c)     # free row-major reshape (contiguous)

    # Block sizing: sublane-dense (BLOCK_R, 128*K) with BLOCK_R % 8 == 0 and
    # BLOCK_R <= R.  Default 2048 rows = 3 MiB (f32) useful data per grid step;
    # with double buffering + elementwise temporaries this stays well under the
    # 48 MiB budget even on v7x (64 MiB physical VMEM).  On v6e (128 MiB VMEM)
    # block_rows can be raised to 4096-8192 if the DMA is still exposed.
    block_rows = max(8, _round_down(int(block_rows), 8))
    block_r = min(block_rows, _round_down(r, 8))
    grid_r = pl.cdiv(r, block_r)
    rem_rows = r - (grid_r - 1) * block_r   # valid rows in the last block

    # Leading "parallel" axis: splits the reduction across TensorCores on v7x
    # (2 TC/chip); runs serially (and essentially free) on v5e / v6e.
    num_parts = max(1, min(int(num_parts), grid_r))
    steps_per_part = pl.cdiv(grid_r, num_parts)

    kernel = functools.partial(
        _curvature_kernel, k=k, block_r=block_r, lane_c=lane_c, grid_r=grid_r,
        steps_per_part=steps_per_part, rem_rows=rem_rows)

    parts = pl.pallas_call(
        kernel,
        out_shape=jax.ShapeDtypeStruct((num_parts, 8, lane_c), jnp.float32),
        grid_spec=pltpu.PrefetchScalarGridSpec(
            num_scalar_prefetch=0,
            grid=(num_parts, steps_per_part),
            in_specs=[pl.BlockSpec(
                (block_r, lane_c),
                # Phantom steps of the last part clamp to the final block; the
                # kernel skips their contribution.
                lambda p, i: (jnp.minimum(p * steps_per_part + i, grid_r - 1), 0),
            )],
            out_specs=pl.BlockSpec((1, 8, lane_c), lambda p, i: (p, 0, 0)),
        ),
        compiler_params=pltpu.CompilerParams(
            dimension_semantics=("parallel", "arbitrary"),
            vmem_limit_bytes=48 * 1024 * 1024,
        ),
        cost_estimate=pl.CostEstimate(
            flops=4 * m * k,
            transcendentals=0,
            bytes_accessed=total_bytes + num_parts * 8 * lane_c * 4,
        ),
    )(x2d)

    # Real group sums live on lanes where lane % k == (k-1)//2; all other lanes
    # hold roll garbage and are zeroed here (tiny (parts, 8, 384) epilogue).
    lane_mask = ((jnp.arange(lane_c) % k) == ((k - 1) // 2)).astype(jnp.float32)
    loss = jnp.sum(parts * lane_mask) / jnp.float32(m)

    # Weight is returned as a plain Python float, exactly as the PyTorch module
    # returns config.weight (no scheduler configured).
    return loss, float(weight)


if __name__ == "__main__":
    key = jax.random.PRNGKey(0)
    k1, k2, k3 = jax.random.split(key, 3)

    def ref_loss(h):
        return jnp.mean(jnp.abs(jnp.sum(h.astype(jnp.float32), axis=-1)))

    # Case 1: Pallas path, single block (grid 1x1), no ragged tail.
    h1 = jax.random.normal(k1, (2048, 3, 3), dtype=jnp.float32)   # M = 6144
    loss1, w = curvature_loss(h1, step=0, min_pallas_bytes=0)
    loss1 = jax.block_until_ready(loss1)
    assert jnp.allclose(loss1, ref_loss(h1), rtol=1e-5, atol=1e-6), (loss1, ref_loss(h1))
    assert w == 0.0005

    # Case 2: Pallas path with a ragged last block, 2 parallel parts and a
    # phantom (skipped) grid step.
    h2 = jax.random.normal(k2, (32, 160, 3), dtype=jnp.float32)   # M = 5120
    loss2, _ = curvature_loss(h2, step=0, min_pallas_bytes=0, block_rows=16)
    loss2 = jax.block_until_ready(loss2)
    assert jnp.allclose(loss2, ref_loss(h2), rtol=1e-5, atol=1e-6), (loss2, ref_loss(h2))

    # Case 3: small-input fast path (plain JAX, no pallas_call launch).
    h3 = jax.random.normal(k3, (256, 3, 3), dtype=jnp.float32)
    loss3, _ = curvature_loss(h3, step=0)
    loss3 = jax.block_until_ready(loss3)
    assert jnp.allclose(loss3, ref_loss(h3), rtol=1e-5, atol=1e-6), (loss3, ref_loss(h3))

    print("KERNEL_OK")
</pallas_src>

<mosaic_0001>
module attributes {stable_mosaic.version = 11 : i64} {
  func.func @_curvature_kernel(%arg0: i32, %arg1: i32, %arg2: memref<48x384xf32, #tpu.memory_space<vmem>>, %arg3: memref<1x8x384xf32, #tpu.memory_space<vmem>>) attributes {dimension_semantics = [#tpu.dimension_semantics<parallel>, #tpu.dimension_semantics<arbitrary>], iteration_bounds = array<i64: 1, 1>, scalar_prefetch = 0 : i64, scratch_operands = 0 : i64, tpu.core_type = #tpu.core_type<tc>, window_params = [{transform_indices = @transform_0, window_bounds = array<i64: 48, 384>}, {transform_indices = @transform_1, window_bounds = array<i64: 1, 8, 384>}]} {
    %c1_i32 = arith.constant 1 : i32
    %0 = arith.muli %arg0, %c1_i32 : i32
    %1 = arith.addi %0, %arg1 : i32
    %c0_i32 = arith.constant 0 : i32
    %2 = arith.cmpi eq, %arg1, %c0_i32 : i32
    %3 = arith.extui %2 : i1 to i32
    %c0_i32_0 = arith.constant 0 : i32
    %4 = arith.cmpi ne, %3, %c0_i32_0 : i32
    scf.if %4 {
      %cst = arith.constant 0.000000e+00 : f32
      %8 = vector.broadcast %cst : f32 to vector<1x8x384xf32>
      %c0 = arith.constant 0 : index
      %c0_3 = arith.constant 0 : index
      %c0_4 = arith.constant 0 : index
      %9 = vector.load %arg3[%c0, %c0_3, %c0_4] : memref<1x8x384xf32, #tpu.memory_space<vmem>>, vector<1x8x384xf32>
      tpu.vector_store %arg3[%c0, %c0_3, %c0_4], %8 {strides = array<i32>} : memref<1x8x384xf32, #tpu.memory_space<vmem>>, vector<1x8x384xf32>,
    } else {
    }
    %c1_i32_1 = arith.constant 1 : i32
    %5 = arith.cmpi slt, %1, %c1_i32_1 : i32
    %6 = arith.extui %5 : i1 to i32
    %c0_i32_2 = arith.constant 0 : i32
    %7 = arith.cmpi ne, %6, %c0_i32_2 : i32
    scf.if %7 {
      %c0 = arith.constant 0 : index
      %c0_3 = arith.constant 0 : index
      %8 = vector.load %arg2[%c0, %c0_3] : memref<48x384xf32, #tpu.memory_space<vmem>>, vector<48x384xf32>
      %c1_i32_4 = arith.constant 1 : i32
      %9 = tpu.dynamic_rotate %8 by %c1_i32_4 dim 1 : vector<48x384xf32>, i32 -> vector<48x384xf32>
      %10 = arith.addf %8, %9 : vector<48x384xf32>
      %c383_i32 = arith.constant 383 : i32
      %11 = tpu.dynamic_rotate %8 by %c383_i32 dim 1 : vector<48x384xf32>, i32 -> vector<48x384xf32>
      %12 = arith.addf %10, %11 : vector<48x384xf32>
      %13 = math.absf %12 : vector<48x384xf32>
      %14 = vector.shape_cast %13 : vector<48x384xf32> to vector<6x8x384xf32>
      %cst = arith.constant dense<0.000000e+00> : vector<8x384xf32>
      %15 = vector.multi_reduction <add>, %14, %cst [0] : vector<6x8x384xf32> to vector<8x384xf32>
      %c0_5 = arith.constant 0 : index
      %c0_6 = arith.constant 0 : index
      %c0_7 = arith.constant 0 : index
      %16 = vector.load %arg3[%c0_5, %c0_6, %c0_7] : memref<1x8x384xf32, #tpu.memory_space<vmem>>, vector<1x8x384xf32>
      %17 = vector.shape_cast %16 : vector<1x8x384xf32> to vector<8x384xf32>
      %18 = arith.addf %17, %15 : vector<8x384xf32>
      %c0_8 = arith.constant 0 : index
      %c0_9 = arith.constant 0 : index
      %c0_10 = arith.constant 0 : index
      %19 = vector.load %arg3[%c0_8, %c0_9, %c0_10] : memref<1x8x384xf32, #tpu.memory_space<vmem>>, vector<1x8x384xf32>
      %20 = vector.shape_cast %19 : vector<1x8x384xf32> to vector<8x384xf32>
      %21 = vector.shape_cast %18 : vector<8x384xf32> to vector<1x8x384xf32>
      tpu.vector_store %arg3[%c0_8, %c0_9, %c0_10], %21 {strides = array<i32>} : memref<1x8x384xf32, #tpu.memory_space<vmem>>, vector<1x8x384xf32>,
    } else {
    }
    return
  }
  func.func @transform_0(%arg0: i32, %arg1: i32) -> (i32, i32) {
    %c1_i32 = arith.constant 1 : i32
    %0 = arith.muli %arg0, %c1_i32 : i32
    %1 = arith.addi %0, %arg1 : i32
    %c0_i32 = arith.constant 0 : i32
    %2 = arith.minsi %1, %c0_i32 : i32
    %c0_i32_0 = arith.constant 0 : i32
    %c0_i32_1 = arith.constant 0 : i32
    return %2, %c0_i32_0 : i32, i32
  }
  func.func @transform_1(%arg0: i32, %arg1: i32) -> (i32, i32, i32) {
    %c0_i32 = arith.constant 0 : i32
    %c0_i32_0 = arith.constant 0 : i32
    %c0_i32_1 = arith.constant 0 : i32
    return %arg0, %c0_i32, %c0_i32_0 : i32, i32, i32
  }
}

</mosaic_0001>

<bundles_post_ra>
// kernel: tpu_custom_call.1
= control target key start
LH: loop header
LB: loop body
LE: loop exit
PB: predicated region body
PF: predicated region fallthrough
CT: control target
= control target key end

     0   :  { %6 = vsyncpa [#allocation3], 0  ;;  %s584_s0 = inlined_call_operand.hbm [shape: f32[48,384], index: 0, kind: input, shape index: {}]   ;;  %s585_s1 = inlined_call_operand.hbm [shape: f32[1,8,384], index: 1, kind: output, shape index: {}]  }
   0x1   :  { %7 = vsyncpa [#allocation4], 0  ;;  %s326_s6 = smov [#allocation2]   ;;  %s278_s10 = scalar_lea.hbm %s584_s0, 2304 }
   0x2   :  { %s20_s7 = sshll.u32 %s326_s6, 4  ;;  %p279_p0 = scmp.ne.s32.totalorder %s584_s0, %s278_s10  ;;  %s21_s7 = int_to_ptr.vmem [resolvable:$true] %s20_s7 }
   0x3   :  { %p282_p1 = scmp.lt.u32.totalorder %s278_s10, %s584_s0 }
   0x5   :  { %p284_p2 = pnand %p282_p1, %p279_p0 }
   0x7   :  { %287 = shalt.err (!%p284_p2)
}
   0x8   :  { %s288_s15 = scalar_lea.vmem %s21_s7, 2304  ;;  %p293_p4 = scmp.lt.s32.totalorder %s21_s7, %s21_s7 }
   0x9   :  { %p289_p3 = scmp.ne.s32.totalorder %s21_s7, %s288_s15  ;;  %p294_p5 = scmp.lt.s32.totalorder %s288_s15, %s288_s15 }
   0xb   :  { %p295_p6 = por %p294_p5, %p293_p4 }
   0xd   :  { %p296_p7 = pnand %p295_p6, %p289_p3 }
   0xf   :  { %299 = shalt.err (!%p296_p7)
}
  0x10   :  { %s327_s16 = smov 384   ;;  %s328_s17 = smov 24  }
  0x11   :  { %26 = dma.hbm_to_vmem [thread:$0]  %s584_s0, 2304, %s21_s7, [#allocation3], %s327_s16, %s327_s16, %s328_s17  }
  0x12   :  { %322 = dma.done.wait [#allocation3], 2304  }
  0x13   :  { %323 = vsyncadd [#allocation3], 4294964992  ;;  %v354_v0 = vld [vmem:[#allocation2 + $0x8] sm:$0xff]  ;;  %v356_v1 = vld [vmem:[#allocation2] sm:$0xff]  ;;  %s329_s20 = smov 1   ;;  %s330_s0 = smov 127   ;;  %v100_v36 = vlaneseq }
  0x14   :  { %76 = vrot.lane.b32.xlu1 %v354_v0, %s329_s20  ;;  %64 = vrot.lane.b32.xlu0 %v356_v1, %s329_s20  ;;  %v362_v2 = vld [vmem:[#allocation2 + $0x20] sm:$0xff]  ;;  %v364_v3 = vld [vmem:[#allocation2 + $0x18] sm:$0xff]  ;;  %v370_v4 = vld [vmem:[#allocation2 + $0x28] sm:$0xff]  ;;  %s331_s21 = smov [#allocation5]  }
  0x15   :  { %v372_v5 = vld [vmem:[#allocation2 + $0x10] sm:$0xff]  ;;  %v378_v6 = vld [vmem:[#allocation2 + $0x38] sm:$0xff]  ;;  %v386_v8 = vld [vmem:[#allocation2 + $0x40] sm:$0xff]  ;;  %v464_v39 = vand.u32 127, %v100_v36  ;;  %s260_s22 = sshll.u32 %s331_s21, 4  ;;  %s261_s22 = int_to_ptr.vmem [resolvable:$true] %s260_s22 }
  0x16   :  { %v380_v7 = vld [vmem:[#allocation2 + $0x30] sm:$0xff]  ;;  %v400_v9 = vld [vmem:[#allocation2 + $0x48] sm:$0xff]  ;;  %v406_v10 = vld [vmem:[#allocation2 + $0x58] sm:$0xff]  ;;  %s300_s23 = scalar_lea.vmem %s261_s22, 384  ;;  %p305_p9 = scmp.lt.s32.totalorder %s261_s22, %s261_s22 }
  0x17   :  { %v408_v11 = vld [vmem:[#allocation2 + $0x50] sm:$0xff]  ;;  %v418_v12 = vld [vmem:[#allocation2 + $0x60] sm:$0xff]  ;;  %v426_v14 = vld [vmem:[#allocation2 + $0x68] sm:$0xff]  ;;  %vm102_vm0 = vcmp.lt.s32.totalorder %v464_v39, 1  ;;  %vm175_vm1 = vcmp.lt.s32.totalorder %v464_v39, 127  ;;  %p301_p8 = scmp.ne.s32.totalorder %s261_s22, %s300_s23  ;;  %p306_p10 = scmp.lt.s32.totalorder %s300_s23, %s300_s23 }
  0x18   :  { %78 = vrot.lane.b32.xlu1 %v362_v2, %s329_s20  ;;  %66 = vrot.lane.b32.xlu0 %v364_v3, %s329_s20  ;;  %v424_v13 = vld [vmem:[#allocation2 + $0x70] sm:$0xff]  ;;  %v436_v15 = vld [vmem:[#allocation2 + $0x78] sm:$0xff]  ;;  %v442_v16 = vld [vmem:[#allocation2 + $0x88] sm:$0xff] }
  0x19   :  { %v444_v17 = vld [vmem:[#allocation2 + $0x80] sm:$0xff]  ;;  %p307_p11 = por %p306_p10, %p305_p9 }
  0x1b   :  { %p308_p12 = pnand %p307_p11, %p301_p8 }
  0x1c   :  { %90 = vrot.lane.b32.xlu1 %v370_v4, %s329_s20  ;;  %88 = vrot.lane.b32.xlu0 %v372_v5, %s329_s20 }
  0x20   :  { %80 = vrot.lane.b32.xlu1 %v378_v6, %s329_s20  ;;  %68 = vrot.lane.b32.xlu0 %v380_v7, %s329_s20 }
  0x24   :  { %139 = vrot.lane.b32.xlu1 %v356_v1, %s330_s0  ;;  %92 = vrot.lane.b32.xlu0 %v386_v8, %s329_s20 }
  0x28   :  { %151 = vrot.lane.b32.xlu1 %v354_v0, %s330_s0  ;;  %141 = vrot.lane.b32.xlu0 %v364_v3, %s330_s0 }
  0x2c   :  { %163 = vrot.lane.b32.xlu1 %v372_v5, %s330_s0  ;;  %153 = vrot.lane.b32.xlu0 %v362_v2, %s330_s0 }
  0x30   :  { %70 = vrot.lane.b32.xlu1 %v400_v9, %s329_s20  ;;  %165 = vrot.lane.b32.xlu0 %v370_v4, %s330_s0 }
  0x34   :  { %94 = vrot.lane.b32.xlu1 %v406_v10, %s329_s20  ;;  %82 = vrot.lane.b32.xlu0 %v408_v11, %s329_s20 }
  0x38   :  { %155 = vrot.lane.b32.xlu1 %v378_v6, %s330_s0  ;;  %143 = vrot.lane.b32.xlu0 %v380_v7, %s330_s0 }
  0x3c   :  { %72 = vrot.lane.b32.xlu1 %v418_v12, %s329_s20  ;;  %167 = vrot.lane.b32.xlu0 %v386_v8, %s330_s0 }
  0x40   :  { %96 = vrot.lane.b32.xlu1 %v424_v13, %s329_s20  ;;  %84 = vrot.lane.b32.xlu0 %v426_v14, %s329_s20 }
  0x44   :  { %157 = vrot.lane.b32.xlu1 %v408_v11, %s330_s0  ;;  %145 = vrot.lane.b32.xlu0 %v400_v9, %s330_s0 }
  0x48   :  { %74 = vrot.lane.b32.xlu1 %v436_v15, %s329_s20  ;;  %169 = vrot.lane.b32.xlu0 %v406_v10, %s330_s0 }
  0x4c   :  { %98 = vrot.lane.b32.xlu1 %v442_v16, %s329_s20  ;;  %86 = vrot.lane.b32.xlu0 %v444_v17, %s329_s20 }
  0x50   :  { %159 = vrot.lane.b32.xlu1 %v426_v14, %s330_s0  ;;  %147 = vrot.lane.b32.xlu0 %v418_v12, %s330_s0 }
  0x54   :  { %149 = vrot.lane.b32.xlu1 %v436_v15, %s330_s0  ;;  %171 = vrot.lane.b32.xlu0 %v424_v13, %s330_s0 }
  0x58   :  { %173 = vrot.lane.b32.xlu1 %v442_v16, %s330_s0  ;;  %161 = vrot.lane.b32.xlu0 %v444_v17, %s330_s0 }
  0x86   :  { %v77_v18 = vpop.permute.xlu1 %76  ;;  %v65_v19 = vpop.permute.xlu0 %64 }
  0x87   :  { %v109_v47 = vsel %vm102_vm0, %v65_v19, %v77_v18 }
  0x88   :  { %v122_v60 = vadd.f32 %v109_v47, %v354_v0 }
  0x8a   :  { %v79_v20 = vpop.permute.xlu1 %78  ;;  %v67_v21 = vpop.permute.xlu0 %66 }
  0x8b   :  { %v110_v48 = vsel %vm102_vm0, %v67_v21, %v79_v20 }
  0x8c   :  { %v125_v61 = vadd.f32 %v110_v48, %v362_v2 }
  0x8e   :  { %v91_v22 = vpop.permute.xlu1 %90  ;;  %v89_v23 = vpop.permute.xlu0 %88 }
  0x8f   :  { %v116_v42 = vsel %vm102_vm0, %v91_v22, %v67_v21  ;;  %v115_v45 = vsel %vm102_vm0, %v89_v23, %v65_v19  ;;  %v104_v49 = vsel %vm102_vm0, %v79_v20, %v91_v22  ;;  %v103_v51 = vsel %vm102_vm0, %v77_v18, %v89_v23 }
  0x90   :  { %v124_v50 = vadd.f32 %v116_v42, %v364_v3  ;;  %v121_v52 = vadd.f32 %v115_v45, %v356_v1  ;;  %v126_v62 = vadd.f32 %v104_v49, %v370_v4  ;;  %v123_v1 = vadd.f32 %v103_v51, %v372_v5 }
  0x92   :  { %v81_v24 = vpop.permute.xlu1 %80  ;;  %v69_v25 = vpop.permute.xlu0 %68 }
  0x93   :  { %v111_v20 = vsel %vm102_vm0, %v69_v25, %v81_v24 }
  0x96   :  { %v140_v26 = vpop.permute.xlu1 %139  ;;  %v93_v27 = vpop.permute.xlu0 %92 }
  0x97   :  { %v117_v56 = vsel %vm102_vm0, %v93_v27, %v69_v25  ;;  %v105_v23 = vsel %vm102_vm0, %v81_v24, %v93_v27 }
  0x98   :  { %v127_v0 = vadd.f32 %v117_v56, %v380_v7  ;;  %v129_v25 = vadd.f32 %v105_v23, %v386_v8 }
  0x9a   :  { %v152_v28 = vpop.permute.xlu1 %151  ;;  %v142_v29 = vpop.permute.xlu0 %141 }
  0x9b   :  { %v182_v53 = vsel %vm175_vm1, %v140_v26, %v152_v28 }
  0x9c   :  { %v194_v3 = vadd.f32 %v182_v53, %v121_v52 }
  0x9e   :  { %v164_v30 = vpop.permute.xlu1 %163  ;;  %v154_v31 = vpop.permute.xlu0 %153 }
  0x9f   :  { %v183_v46 = vsel %vm175_vm1, %v142_v29, %v154_v31  ;;  %v176_v57 = vsel %vm175_vm1, %v152_v28, %v164_v30  ;;  %v188_v63 = vsel %vm175_vm1, %v164_v30, %v140_v26 }
  0xa0   :  { %v197_v58 = vadd.f32 %v183_v46, %v124_v50  ;;  %v195_v2 = vadd.f32 %v176_v57, %v122_v60  ;;  %v196_v5 = vadd.f32 %v188_v63, %v123_v1 }
  0xa2   :  { %v462_v32 = vpop.permute.xlu1 %70  ;;  %v166_v33 = vpop.permute.xlu0 %165  ;;  %v215_v26 = vand.u32 2147483647, %v197_v58  ;;  %v213_v7 = vand.u32 2147483647, %v195_v2  ;;  %v214_v24 = vand.u32 2147483647, %v196_v5 }
  0xa3   :  { %v177_v59 = vsel %vm175_vm1, %v154_v31, %v166_v33  ;;  %v189_v18 = vsel %vm175_vm1, %v166_v33, %v142_v29  ;;  %v128_v29 = vadd.f32 %v111_v20, %v378_v6  ;;  %v212_v31 = vand.u32 2147483647, %v194_v3 }
  0xa4   :  { %v198_v21 = vadd.f32 %v177_v59, %v125_v61  ;;  %v199_v28 = vadd.f32 %v189_v18, %v126_v62 }
  0xa5   :  { %v230_v27 = vadd.f32 %v215_v26, %v212_v31 }
  0xa6   :  { %v95_v34 = vpop.permute.xlu1 %94  ;;  %v83_v35 = vpop.permute.xlu0 %82  ;;  %v216_v36 = vand.u32 2147483647, %v198_v21  ;;  %v217_v48 = vand.u32 2147483647, %v199_v28 }
  0xa7   :  { %v118_v47 = vsel %vm102_vm0, %v95_v34, %v462_v32  ;;  %v106_v6 = vsel %vm102_vm0, %v83_v35, %v95_v34  ;;  %v112_v8 = vsel %vm102_vm0, %v462_v32, %v83_v35 }
  0xa8   :  { %v235_v34 = vadd.f32 %v216_v36, %v213_v7  ;;  %v130_v52 = vadd.f32 %v118_v47, %v400_v9  ;;  %v132_v53 = vadd.f32 %v106_v6, %v406_v10  ;;  %v131_v57 = vadd.f32 %v112_v8, %v408_v11 }
  0xa9   :  { %v240_v10 = vadd.f32 %v217_v48, %v214_v24 }
  0xaa   :  { %v156_v37 = vpop.permute.xlu1 %155  ;;  %v144_v38 = vpop.permute.xlu0 %143 }
  0xab   :  { %v184_v19 = vsel %vm175_vm1, %v144_v38, %v156_v37 }
  0xac   :  { %v200_v30 = vadd.f32 %v184_v19, %v127_v0 }
  0xae   :  { %v466_v40 = vpop.permute.xlu1 %72  ;;  %v168_v41 = vpop.permute.xlu0 %167 }
  0xaf   :  { %v178_v33 = vsel %vm175_vm1, %v156_v37, %v168_v41  ;;  %v190_v42 = vsel %vm175_vm1, %v168_v41, %v144_v38  ;;  %v218_v37 = vand.u32 2147483647, %v200_v30 }
  0xb0   :  { %v201_v49 = vadd.f32 %v178_v33, %v128_v29  ;;  %v202_v50 = vadd.f32 %v190_v42, %v129_v25 }
  0xb1   :  { %v231_v61 = vadd.f32 %v230_v27, %v218_v37 }
  0xb2   :  { %v471_v43 = vpop.permute.xlu1 %96  ;;  %v473_v44 = vpop.permute.xlu0 %84  ;;  %v219_v11 = vand.u32 2147483647, %v201_v49  ;;  %v220_v62 = vand.u32 2147483647, %v202_v50 }
  0xb3   :  { %v119_v38 = vsel %vm102_vm0, %v471_v43, %v466_v40  ;;  %v107_v58 = vsel %vm102_vm0, %v473_v44, %v471_v43 }
  0xb4   :  { %v135_v43 = vadd.f32 %v107_v58, %v424_v13  ;;  %v241_v23 = vadd.f32 %v240_v10, %v220_v62 }
  0xb6   :  { %v158_v54 = vpop.permute.xlu1 %157  ;;  %v146_v55 = vpop.permute.xlu0 %145 }
  0xb7   :  { %v185_v41 = vsel %vm175_vm1, %v146_v55, %v158_v54 }
  0xb8   :  { %v203_v59 = vadd.f32 %v185_v41, %v130_v52 }
  0xba   :  { %v75_v4 = vpop.permute.xlu1 %74  ;;  %v170_v22 = vpop.permute.xlu0 %169  ;;  %v221_v0 = vand.u32 2147483647, %v203_v59 }
  0xbb   :  { %v191_v51 = vsel %vm175_vm1, %v170_v22, %v146_v55  ;;  %v179_v32 = vsel %vm175_vm1, %v158_v54, %v170_v22  ;;  %v113_v55 = vsel %vm102_vm0, %v466_v40, %v473_v44  ;;  %v133_v54 = vadd.f32 %v119_v38, %v418_v12 }
  0xbc   :  { %v205_v60 = vadd.f32 %v191_v51, %v132_v53  ;;  %v204_v63 = vadd.f32 %v179_v32, %v131_v57  ;;  %v134_v1 = vadd.f32 %v113_v55, %v426_v14  ;;  %v236_v22 = vadd.f32 %v235_v34, %v219_v11 }
  0xbe   :  { %v99_v45 = vpop.permute.xlu1 %98  ;;  %v87_v46 = vpop.permute.xlu0 %86  ;;  %v223_v13 = vand.u32 2147483647, %v205_v60  ;;  %v222_v5 = vand.u32 2147483647, %v204_v63 }
  0xbf   :  { %v120_v3 = vsel %vm102_vm0, %v99_v45, %v75_v4  ;;  %v108_v19 = vsel %vm102_vm0, %v87_v46, %v99_v45  ;;  %v114_v12 = vsel %vm102_vm0, %v75_v4, %v87_v46  ;;  %v232_v45 = vadd.f32 %v231_v61, %v221_v0 }
  0xc0   :  { %v136_v26 = vadd.f32 %v120_v3, %v436_v15  ;;  %v137_v28 = vadd.f32 %v114_v12, %v444_v17  ;;  %v138_v30 = vadd.f32 %v108_v19, %v442_v16  ;;  %v242_v15 = vadd.f32 %v241_v23, %v223_v13 }
  0xc1   :  { %v237_v24 = vadd.f32 %v236_v22, %v222_v5 }
  0xc2   :  { %v160_v35 = vpop.permute.xlu1 %159  ;;  %v148_v56 = vpop.permute.xlu0 %147 }
  0xc3   :  { %v186_v9 = vsel %vm175_vm1, %v148_v56, %v160_v35 }
  0xc4   :  { %v206_v40 = vadd.f32 %v186_v9, %v133_v54 }
  0xc6   :  { %v150_v44 = vpop.permute.xlu1 %149  ;;  %v172_v18 = vpop.permute.xlu0 %171  ;;  %v224_v4 = vand.u32 2147483647, %v206_v40 }
  0xc7   :  { %v180_v20 = vsel %vm175_vm1, %v160_v35, %v172_v18  ;;  %v192_v14 = vsel %vm175_vm1, %v172_v18, %v148_v56 }
  0xc8   :  { %v207_v2 = vadd.f32 %v180_v20, %v134_v1  ;;  %v208_v21 = vadd.f32 %v192_v14, %v135_v43  ;;  %v233_v27 = vadd.f32 %v232_v45, %v224_v4 }
  0xca   :  { %v226_v29 = vand.u32 2147483647, %v208_v21  ;;  %v174_v31 = vpop.permute.xlu1 %173  ;;  %v162_v33 = vpop.permute.xlu0 %161  ;;  %v225_v25 = vand.u32 2147483647, %v207_v2 }
  0xcb   :  { %v193_v7 = vsel %vm175_vm1, %v174_v31, %v150_v44  ;;  %v181_v36 = vsel %vm175_vm1, %v162_v33, %v174_v31  ;;  %v187_v42 = vsel %vm175_vm1, %v150_v44, %v162_v33 }
  0xcc   :  { %v211_v46 = vadd.f32 %v193_v7, %v138_v30  ;;  %v209_v17 = vadd.f32 %v187_v42, %v136_v26  ;;  %v210_v16 = vadd.f32 %v181_v36, %v137_v28  ;;  %v243_v47 = vadd.f32 %v242_v15, %v226_v29 }
  0xcd   :  { %v238_v8 = vadd.f32 %v237_v24, %v225_v25 }
  0xce   :  { %v229_v6 = vand.u32 2147483647, %v211_v46  ;;  %v227_v48 = vand.u32 2147483647, %v209_v17  ;;  %v228_v37 = vand.u32 2147483647, %v210_v16 }
  0xd0   :  { %v244_v49 = vadd.f32 %v243_v47, %v229_v6  ;;  %v234_v50 = vadd.f32 %v233_v27, %v227_v48  ;;  %v239_v38 = vadd.f32 %v238_v8, %v228_v37 }
  0xd2   :  { %253 = vst [vmem:[#allocation5 + $0x10] sm:$0xff] %v244_v49  ;;  %251 = vst [vmem:[#allocation5] sm:$0xff] %v234_v50 }
  0xd3   :  { %252 = vst [vmem:[#allocation5 + $0x8] sm:$0xff] %v239_v38 }
  0xd4   :  { %311 = shalt.err (!%p308_p12)
}
  0xd5   :  { %s312_s26 = scalar_lea.hbm %s585_s1, 384 }
  0xd6   :  { %p313_p13 = scmp.ne.s32.totalorder %s585_s1, %s312_s26  ;;  %p316_p0 = scmp.lt.u32.totalorder %s312_s26, %s585_s1 }
  0xd8   :  { %p318_p1 = pnand %p316_p0, %p313_p13 }
  0xda   :  { %321 = shalt.err (!%p318_p1)
}
  0xdb   :  { %263 = dma.vmem_to_hbm [thread:$0]  %s261_s22, 384, %s585_s1, [#allocation4]  }
  0xdc   :  { %324 = dma.done.wait [#allocation4], 384  }
  0xdd   :  { %325 = vsyncadd [#allocation4], 4294966912 }
  0xde   :  { %267 = vsyncpa [#allocation3], 1 }
  0xdf   :  { %268 = vsyncpa [#allocation4], 1 }

</bundles_post_ra>
